<compile_context>
chip_gen: v5e
topology: v5e:2x2
jax: 0.10.0
libtpu: 0.0.40
codegen_flags: <defaults>
</compile_context>

<pallas_src>
import math
from functools import partial

import jax
import jax.numpy as jnp
import numpy as np
from jax.experimental import pallas as pl
from jax.experimental.pallas import tpu as pltpu

LANE = 128       # lane width (last dim alignment)
SUBLANE = 8      # f32 sublane count (second-last dim alignment)


def _round_up(x, m):
    return ((x + m - 1) // m) * m


# ---------------------------------------------------------------------------
# Pallas kernel: fused multi-critic MLP forward (Linear -> ReLU -> ... -> Linear)
# One grid step = (one critic, one batch tile); full layer chain fused.
# ---------------------------------------------------------------------------
def _make_fused_kernel(n_layers):
    """Ref order: x, W1, b1, W2, b2, ..., Wn, bn, out (all with leading critic dim of 1)."""

    def kernel(x_ref, *refs):
        out_ref = refs[-1]
        wb_refs = refs[:-1]
        h = x_ref[0]                                  # (TB, d_in_pad), already f32
        for j in range(n_layers):
            w = wb_refs[2 * j][0]                     # (d_j_pad, d_{j+1}_pad)
            b = wb_refs[2 * j + 1][0]                 # (1, d_{j+1}_pad)
            h = jnp.dot(h, w, preferred_element_type=jnp.float32) + b
            if j < n_layers - 1:                      # hidden: ReLU; last: Identity
                h = jnp.maximum(h, 0.0)
        out_ref[0] = h

    return kernel


def critic_forward_pallas(x_all, weights, biases, *, batch_tile):
    """Fused forward for all critics in one pallas_call.

    x_all:      (n_critics, B_pad, d_in_pad)     f32, zero-padded
    weights[j]: (n_critics, d_j_pad, d_{j+1}_pad) f32, zero-padded
    biases[j]:  (n_critics, 1, d_{j+1}_pad)       f32, zero-padded
    returns     (n_critics, B_pad, d_out_pad)     f32
    """
    n_critics, b_pad, d_in_pad = x_all.shape
    n_layers = len(weights)
    d_out_pad = weights[-1].shape[-1]
    n_bt = b_pad // batch_tile

    kernel = _make_fused_kernel(n_layers)

    in_specs = [pl.BlockSpec((1, batch_tile, d_in_pad), lambda i, b: (i, b, 0))]
    args = [x_all]
    for w, bia in zip(weights, biases):
        in_specs.append(pl.BlockSpec((1, w.shape[1], w.shape[2]), lambda i, b: (i, 0, 0)))
        in_specs.append(pl.BlockSpec((1, 1, bia.shape[2]), lambda i, b: (i, 0, 0)))
        args.append(w)
        args.append(bia)

    out_spec = pl.BlockSpec((1, batch_tile, d_out_pad), lambda i, b: (i, b, 0))
    out_shape = jax.ShapeDtypeStruct((n_critics, b_pad, d_out_pad), jnp.float32)

    # Per-step VMEM working set (double-buffered by the pipeline); budget sized so
    # it stays well inside v7x's 64 MiB physical VMEM.
    step_bytes = (batch_tile * d_in_pad + batch_tile * d_out_pad) * 4
    for w, bia in zip(weights, biases):
        step_bytes += (w.shape[1] * w.shape[2] + bia.shape[2]) * 4
    vmem_limit = int(min(max(3 * step_bytes + (4 << 20), 16 << 20), 64 << 20))

    return pl.pallas_call(
        kernel,
        out_shape=out_shape,
        grid=(n_critics, n_bt),
        in_specs=in_specs,
        out_specs=out_spec,
        compiler_params=pltpu.CompilerParams(
            dimension_semantics=("parallel", "parallel"),   # v7x: shard across 2 TCs
            vmem_limit_bytes=vmem_limit,
        ),
    )(*args)


# ---------------------------------------------------------------------------
# Parameter construction (deterministic, mirrors torch.nn.Linear default init)
# ---------------------------------------------------------------------------
def init_linear(key, fan_in, fan_out):
    kw, kb = jax.random.split(key)
    bound = 1.0 / math.sqrt(fan_in)
    # torch stores (out, in); we store the transpose (in, out) for h @ W.
    w = jax.random.uniform(kw, (fan_in, fan_out), jnp.float32, -bound, bound)
    b = jax.random.uniform(kb, (fan_out,), jnp.float32, -bound, bound)
    return w, b


class CriticPallas:
    """JAX/Pallas equivalent of the PyTorch Critic (tuple of QNetFC Q-values)."""

    def __init__(self, key, n_critics, dim_state, dim_actions, dim_goal, layers, goal_ids):
        self.n_critics = n_critics
        self.dim_state = dim_state
        self.dim_actions = dim_actions
        self.dim_goal = dim_goal
        layers = tuple(layers)

        goal_ids = [np.asarray(g, dtype=np.int64) for g in goal_ids]
        self.input_ids = [
            np.concatenate([np.arange(dim_state), g + dim_state]) for g in goal_ids
        ]
        in_dims = [dim_state + len(g) for g in goal_ids]

        sizes_per_critic = [(in_dims[i],) + layers + (dim_actions,) for i in range(n_critics)]
        n_layers = len(layers) + 1
        max_sizes = tuple(max(s[j] for s in sizes_per_critic) for j in range(n_layers + 1))
        padded_sizes = tuple(_round_up(s, LANE) for s in max_sizes)   # lane-dense everywhere
        self.n_layers = n_layers
        self.in_dim_pad = padded_sizes[0]

        # ---- stacked, zero-padded parameters (one array per layer for ALL critics) ----
        keys = jax.random.split(key, n_critics)
        Ws = [np.zeros((n_critics, padded_sizes[j], padded_sizes[j + 1]), np.float32)
              for j in range(n_layers)]
        Bs = [np.zeros((n_critics, 1, padded_sizes[j + 1]), np.float32)
              for j in range(n_layers)]
        # unpadded per-critic copies for the pure-JAX reference
        self.ref_weights = [[] for _ in range(n_critics)]
        self.ref_biases = [[] for _ in range(n_critics)]
        for i in range(n_critics):
            lkeys = jax.random.split(keys[i], n_layers)
            for j in range(n_layers):
                fan_in = sizes_per_critic[i][j]
                fan_out = sizes_per_critic[i][j + 1]
                w, b = init_linear(lkeys[j], fan_in, fan_out)
                w_np, b_np = np.asarray(w), np.asarray(b)
                Ws[j][i, :fan_in, :fan_out] = w_np
                Bs[j][i, 0, :fan_out] = b_np
                self.ref_weights[i].append(jnp.asarray(w_np))
                self.ref_biases[i].append(jnp.asarray(b_np))
        self.params = {"W": [jnp.asarray(w) for w in Ws],
                       "b": [jnp.asarray(b) for b in Bs]}

        # ---- one stacked gather table for all critics; padded slots hit a zero column ----
        zero_col = dim_state + dim_goal            # index of the appended all-zero column
        idx = np.full((n_critics, self.in_dim_pad), zero_col, dtype=np.int32)
        for i in range(n_critics):
            idx[i, : in_dims[i]] = self.input_ids[i]
        gather_idx = jnp.asarray(idx)

        n_c = n_critics
        d_act = dim_actions

        def _forward(params, obs):
            B = obs.shape[0]
            b_pad = max(_round_up(B, SUBLANE), SUBLANE)      # >= 8 sublanes
            batch_tile = min(b_pad, 512)                     # tile large batches
            b_pad = _round_up(b_pad, batch_tile)
            obs_f32 = obs.astype(jnp.float32)
            obs_aug = jnp.concatenate(
                [obs_f32, jnp.zeros((B, 1), jnp.float32)], axis=1
            )
            # one shared gather for every critic: (B, n_critics, in_dim_pad)
            x = jnp.take(obs_aug, gather_idx, axis=1)
            x = jnp.transpose(x, (1, 0, 2))                  # (n_critics, B, in_dim_pad)
            x = jnp.pad(x, ((0, 0), (0, b_pad - B), (0, 0)))
            out = critic_forward_pallas(x, params["W"], params["b"], batch_tile=batch_tile)
            out = out[:, :B, :d_act]
            return tuple(out[i] for i in range(n_c))

        self._forward_jit = jax.jit(_forward)

    def forward(self, obs):
        return self._forward_jit(self.params, obs)

    # pure-JAX reference for verification
    def forward_ref(self, obs):
        outs = []
        for i in range(self.n_critics):
            h = jnp.take(obs, jnp.asarray(self.input_ids[i]), axis=1)
            n = len(self.ref_weights[i])
            for j, (w, b) in enumerate(zip(self.ref_weights[i], self.ref_biases[i])):
                h = h @ w + b
                if j < n - 1:
                    h = jnp.maximum(h, 0.0)
            outs.append(h)
        return tuple(outs)

    # TODO(synk): set_params/get_params/state_dict/act are host-side parameter plumbing,
    # not part of the forward pass, so they are not translated to Pallas.


# ---------------------------------------------------------------------------
# Demo / self-check
# ---------------------------------------------------------------------------
if __name__ == "__main__":
    key = jax.random.PRNGKey(0)
    k_params, k_obs = jax.random.split(key)

    # Small, module-consistent shapes
    n_critics = 2
    dim_state = 4
    dim_goal = 3
    dim_actions = 3
    layers = (32, 32)
    goal_ids = ((0, 1), (1, 2))   # one tuple per critic
    batch = 2

    critic = CriticPallas(
        k_params, n_critics, dim_state, dim_actions, dim_goal, layers, goal_ids
    )

    obs = jax.random.normal(k_obs, (batch, dim_state + dim_goal), jnp.float32)

    outs = critic.forward(obs)
    outs = jax.block_until_ready(outs)

    # verify against plain-JAX reference
    refs = critic.forward_ref(obs)
    for o, r in zip(outs, refs):
        assert o.shape == (batch, dim_actions)
        np.testing.assert_allclose(np.asarray(o), np.asarray(r), rtol=1e-5, atol=1e-5)

    print("KERNEL_OK")
</pallas_src>

<mosaic_0001>
module attributes {stable_mosaic.version = 11 : i64} {
  func.func @kernel(%arg0: i32, %arg1: i32, %arg2: memref<1x8x128xf32, #tpu.memory_space<vmem>>, %arg3: memref<1x128x128xf32, #tpu.memory_space<vmem>>, %arg4: memref<1x1x128xf32, #tpu.memory_space<vmem>>, %arg5: memref<1x128x128xf32, #tpu.memory_space<vmem>>, %arg6: memref<1x1x128xf32, #tpu.memory_space<vmem>>, %arg7: memref<1x128x128xf32, #tpu.memory_space<vmem>>, %arg8: memref<1x1x128xf32, #tpu.memory_space<vmem>>, %arg9: memref<1x8x128xf32, #tpu.memory_space<vmem>>) attributes {dimension_semantics = [#tpu.dimension_semantics<parallel>, #tpu.dimension_semantics<parallel>], iteration_bounds = array<i64: 2, 1>, scalar_prefetch = 0 : i64, scratch_operands = 0 : i64, tpu.core_type = #tpu.core_type<tc>, window_params = [{transform_indices = @transform_0, window_bounds = array<i64: 1, 8, 128>}, {transform_indices = @transform_1, window_bounds = array<i64: 1, 128, 128>}, {transform_indices = @transform_2, window_bounds = array<i64: 1, 1, 128>}, {transform_indices = @transform_3, window_bounds = array<i64: 1, 128, 128>}, {transform_indices = @transform_4, window_bounds = array<i64: 1, 1, 128>}, {transform_indices = @transform_5, window_bounds = array<i64: 1, 128, 128>}, {transform_indices = @transform_6, window_bounds = array<i64: 1, 1, 128>}, {transform_indices = @transform_7, window_bounds = array<i64: 1, 8, 128>}]} {
    %c0 = arith.constant 0 : index
    %c0_0 = arith.constant 0 : index
    %c0_1 = arith.constant 0 : index
    %0 = vector.load %arg2[%c0, %c0_0, %c0_1] : memref<1x8x128xf32, #tpu.memory_space<vmem>>, vector<1x8x128xf32>
    %1 = vector.shape_cast %0 : vector<1x8x128xf32> to vector<8x128xf32>
    %c0_2 = arith.constant 0 : index
    %c0_3 = arith.constant 0 : index
    %c0_4 = arith.constant 0 : index
    %2 = vector.load %arg3[%c0_2, %c0_3, %c0_4] : memref<1x128x128xf32, #tpu.memory_space<vmem>>, vector<1x128x128xf32>
    %3 = vector.shape_cast %2 : vector<1x128x128xf32> to vector<128x128xf32>
    %c0_5 = arith.constant 0 : index
    %c0_6 = arith.constant 0 : index
    %c0_7 = arith.constant 0 : index
    %4 = vector.load %arg4[%c0_5, %c0_6, %c0_7] : memref<1x1x128xf32, #tpu.memory_space<vmem>>, vector<1x1x128xf32>
    %5 = vector.shape_cast %4 : vector<1x1x128xf32> to vector<1x128xf32>
    %cst = arith.constant dense<0.000000e+00> : vector<8x128xf32>
    %6 = tpu.matmul %1, %3, %cst {dimension_numbers = #tpu.dot_dimension_numbers<[1], [0], [0], [1], [0, 0, 1, 1], [], []>} : vector<8x128xf32>, vector<128x128xf32>, vector<8x128xf32> -> vector<8x128xf32>
    %7 = vector.broadcast %5 : vector<1x128xf32> to vector<8x128xf32>
    %8 = arith.addf %6, %7 : vector<8x128xf32>
    %cst_8 = arith.constant 0.000000e+00 : f32
    %9 = vector.broadcast %cst_8 : f32 to vector<8x128xf32>
    %10 = arith.maximumf %8, %9 : vector<8x128xf32>
    %c0_9 = arith.constant 0 : index
    %c0_10 = arith.constant 0 : index
    %c0_11 = arith.constant 0 : index
    %11 = vector.load %arg5[%c0_9, %c0_10, %c0_11] : memref<1x128x128xf32, #tpu.memory_space<vmem>>, vector<1x128x128xf32>
    %12 = vector.shape_cast %11 : vector<1x128x128xf32> to vector<128x128xf32>
    %c0_12 = arith.constant 0 : index
    %c0_13 = arith.constant 0 : index
    %c0_14 = arith.constant 0 : index
    %13 = vector.load %arg6[%c0_12, %c0_13, %c0_14] : memref<1x1x128xf32, #tpu.memory_space<vmem>>, vector<1x1x128xf32>
    %14 = vector.shape_cast %13 : vector<1x1x128xf32> to vector<1x128xf32>
    %cst_15 = arith.constant dense<0.000000e+00> : vector<8x128xf32>
    %15 = tpu.matmul %10, %12, %cst_15 {dimension_numbers = #tpu.dot_dimension_numbers<[1], [0], [0], [1], [0, 0, 1, 1], [], []>} : vector<8x128xf32>, vector<128x128xf32>, vector<8x128xf32> -> vector<8x128xf32>
    %16 = vector.broadcast %14 : vector<1x128xf32> to vector<8x128xf32>
    %17 = arith.addf %15, %16 : vector<8x128xf32>
    %cst_16 = arith.constant 0.000000e+00 : f32
    %18 = vector.broadcast %cst_16 : f32 to vector<8x128xf32>
    %19 = arith.maximumf %17, %18 : vector<8x128xf32>
    %c0_17 = arith.constant 0 : index
    %c0_18 = arith.constant 0 : index
    %c0_19 = arith.constant 0 : index
    %20 = vector.load %arg7[%c0_17, %c0_18, %c0_19] : memref<1x128x128xf32, #tpu.memory_space<vmem>>, vector<1x128x128xf32>
    %21 = vector.shape_cast %20 : vector<1x128x128xf32> to vector<128x128xf32>
    %c0_20 = arith.constant 0 : index
    %c0_21 = arith.constant 0 : index
    %c0_22 = arith.constant 0 : index
    %22 = vector.load %arg8[%c0_20, %c0_21, %c0_22] : memref<1x1x128xf32, #tpu.memory_space<vmem>>, vector<1x1x128xf32>
    %23 = vector.shape_cast %22 : vector<1x1x128xf32> to vector<1x128xf32>
    %cst_23 = arith.constant dense<0.000000e+00> : vector<8x128xf32>
    %24 = tpu.matmul %19, %21, %cst_23 {dimension_numbers = #tpu.dot_dimension_numbers<[1], [0], [0], [1], [0, 0, 1, 1], [], []>} : vector<8x128xf32>, vector<128x128xf32>, vector<8x128xf32> -> vector<8x128xf32>
    %25 = vector.broadcast %23 : vector<1x128xf32> to vector<8x128xf32>
    %26 = arith.addf %24, %25 : vector<8x128xf32>
    %c0_24 = arith.constant 0 : index
    %c0_25 = arith.constant 0 : index
    %c0_26 = arith.constant 0 : index
    %27 = vector.load %arg9[%c0_24, %c0_25, %c0_26] : memref<1x8x128xf32, #tpu.memory_space<vmem>>, vector<1x8x128xf32>
    %28 = vector.shape_cast %27 : vector<1x8x128xf32> to vector<8x128xf32>
    %29 = vector.shape_cast %26 : vector<8x128xf32> to vector<1x8x128xf32>
    tpu.vector_store %arg9[%c0_24, %c0_25, %c0_26], %29 {strides = array<i32>} : memref<1x8x128xf32, #tpu.memory_space<vmem>>, vector<1x8x128xf32>,
    return
  }
  func.func @transform_0(%arg0: i32, %arg1: i32) -> (i32, i32, i32) {
    %c0_i32 = arith.constant 0 : i32
    %c0_i32_0 = arith.constant 0 : i32
    return %arg0, %arg1, %c0_i32 : i32, i32, i32
  }
  func.func @transform_1(%arg0: i32, %arg1: i32) -> (i32, i32, i32) {
    %c0_i32 = arith.constant 0 : i32
    %c0_i32_0 = arith.constant 0 : i32
    %c0_i32_1 = arith.constant 0 : i32
    return %arg0, %c0_i32, %c0_i32_0 : i32, i32, i32
  }
  func.func @transform_2(%arg0: i32, %arg1: i32) -> (i32, i32, i32) {
    %c0_i32 = arith.constant 0 : i32
    %c0_i32_0 = arith.constant 0 : i32
    %c0_i32_1 = arith.constant 0 : i32
    return %arg0, %c0_i32, %c0_i32_0 : i32, i32, i32
  }
  func.func @transform_3(%arg0: i32, %arg1: i32) -> (i32, i32, i32) {
    %c0_i32 = arith.constant 0 : i32
    %c0_i32_0 = arith.constant 0 : i32
    %c0_i32_1 = arith.constant 0 : i32
    return %arg0, %c0_i32, %c0_i32_0 : i32, i32, i32
  }
  func.func @transform_4(%arg0: i32, %arg1: i32) -> (i32, i32, i32) {
    %c0_i32 = arith.constant 0 : i32
    %c0_i32_0 = arith.constant 0 : i32
    %c0_i32_1 = arith.constant 0 : i32
    return %arg0, %c0_i32, %c0_i32_0 : i32, i32, i32
  }
  func.func @transform_5(%arg0: i32, %arg1: i32) -> (i32, i32, i32) {
    %c0_i32 = arith.constant 0 : i32
    %c0_i32_0 = arith.constant 0 : i32
    %c0_i32_1 = arith.constant 0 : i32
    return %arg0, %c0_i32, %c0_i32_0 : i32, i32, i32
  }
  func.func @transform_6(%arg0: i32, %arg1: i32) -> (i32, i32, i32) {
    %c0_i32 = arith.constant 0 : i32
    %c0_i32_0 = arith.constant 0 : i32
    %c0_i32_1 = arith.constant 0 : i32
    return %arg0, %c0_i32, %c0_i32_0 : i32, i32, i32
  }
  func.func @transform_7(%arg0: i32, %arg1: i32) -> (i32, i32, i32) {
    %c0_i32 = arith.constant 0 : i32
    %c0_i32_0 = arith.constant 0 : i32
    return %arg0, %arg1, %c0_i32 : i32, i32, i32
  }
}

</mosaic_0001>

<bundles_post_ra>
// kernel: _forward.1
= control target key start
LH: loop header
LB: loop body
LE: loop exit
PB: predicated region body
PF: predicated region fallthrough
CT: control target
= control target key end

     0   :  { %s1178_s0 = inlined_call_operand.vmem [shape: f32[2,8,128], index: 0, kind: input, shape index: {}]   ;;  %s1179_s1 = inlined_call_operand.vmem [shape: f32[2,128,128], index: 1, kind: input, shape index: {}]   ;;  %s1180_s2 = inlined_call_operand.vmem [shape: f32[2,1,128], index: 2, kind: input, shape index: {}]   ;;  %s1181_s3 = inlined_call_operand.hbm [shape: f32[2,128,128], index: 3, kind: input, shape index: {}]   ;;  %s1182_s4 = inlined_call_operand.vmem [shape: f32[2,1,128], index: 4, kind: input, shape index: {}]   ;;  %s1183_s5 = inlined_call_operand.hbm [shape: f32[2,128,128], index: 5, kind: input, shape index: {}]   ;;  %s1184_s6 = inlined_call_operand.vmem [shape: f32[2,1,128], index: 6, kind: input, shape index: {}]   ;;  %s1185_s7 = inlined_call_operand.vmem [shape: f32[2,8,128], index: 7, kind: output, shape index: {}]  }
   0x1   :  { %1188 = sst [smem:[#allocation11_spill]] %s1181_s3 }
   0x2   :  { %12 = vsyncpa [#allocation3], 0 }
   0x3   :  { %14 = vsyncpa [#allocation3 + $0x1], 0 }
   0x4   :  { %15 = vsyncpa [#allocation5], 0 }
   0x5   :  { %17 = vsyncpa [#allocation5 + $0x1], 0  ;;  %s980_s24 = smov 0   ;;  %s982_s25 = smov 0  }
   0x6   :  { %s984_s26 = smov 0   ;;  %s986_s27 = smov 0  }
   0x7   :  { %s988_s28 = smov 0   ;;  %s990_s29 = smov 0  }
   0x8 LB: > { %1189 = sst [smem:[#allocation8_spill]] %s932_s28  ;;  %s735_s30 = sadd.s32 4294967295, %s936_s29   ;;  %s936_s29 = sphi %s990_s29, %s23_s29   ;;  %s932_s28 = sphi %s988_s28, %s1198_s28   ;;  %s928_s27 = sphi %s986_s27, %s1197_s27   ;;  %s924_s26 = sphi %s984_s26, %s1201_s26   ;;  %s920_s25 = sphi %s982_s25, %s1200_s25   ;;  %s916_s24 = sphi %s980_s24, %s1199_s24  }
   0x9   : > { %s35_s8 = sadd.s32 1, %s932_s28  ;;  %s122_s9 = sadd.s32 1, %s924_s26 }
   0xa   : > { %p37_p0 = scmp.ge.s32.totalorder %s35_s8, 2  ;;  %p129_p1 = scmp.ne.s32.totalorder %s924_s26, %s920_s25 }
   0xb   : > { %p130_p2 = scmp.eq.s32.totalorder %s936_s29, 0  ;;  %p135_p4 = scmp.ne.s32.totalorder %s920_s25, %s916_s24 }
   0xc   : > { %s1203_s8 = smov (%p37_p0, %s35_s8), 0  ;;  %p136_p5 = scmp.eq.s32.totalorder %s735_s30, 0 }
   0xd   : > { %1190 = sst [smem:[#allocation9_spill]] %s1203_s8  ;;  %p1016_p3 = por %p130_p2, %p129_p1 }
   0xe   : > { %s119_s11 = ssub.s32 %s932_s28, %s1203_s8  ;;  %p1023_p7 = por %p136_p5, %p135_p4 }
   0xf   : > { %p120_p6 = scmp.eq.s32.totalorder %s119_s11, 0  ;;  %p768_p8 = scmp.lt.s32.totalorder %s936_s29, 2 }
  0x10   : > { %s1032_s14 = sand.u32 1, %s924_s26   ;;  %s754_s15 = sshll.u32 %s932_s28, 7 }
  0x11   : > { %s1029_s13 = scalar_select %p120_p6, %s924_s26, %s122_s9  }
  0x12   : > { %s739_s16 = sshll.u32 %s1032_s14, 7  ;;  %s1194_s3 = sld [smem:[#allocation11_spill]] }
  0x13   : > { %1193 = sst [smem:[#allocation10_spill]] %s1029_s13  ;;  %s293_s21 = scalar_lea.vmem [#allocation2], %s739_s16 }
  0x14   : > { %s301_s22 = sshll.u32 %s293_s21, 4  ;;  %p1041_p9 = pnand %p768_p8, %p1016_p3  ;;  %s302_s22 = int_to_ptr.vmem [resolvable:$true] %s301_s22 }
  0x15   : > { %p745_p10 = scmp.ge.s32.totalorder %s936_s29, 1  ;;  %p343_p11 = scmp.lt.s32.totalorder %s936_s29, 3 }
  0x16   : > { %s290_s24 = scalar_lea.sflag [#allocation3], %s1032_s14  ;;  %s938_s30 = smov 128  }
  0x17   : > { %s939_s9 = smov 8   ;;  %p344_p12 = pnand %p745_p10, %p343_p11 }
  0x18   : > { %s298_s19 = scalar_lea.hbm %s1194_s3, %s754_s15  ;;  %s326_s18 = scalar_lea.hbm %s1183_s5, %s754_s15 }
  0x19   : > { %s299_s20 = sshll.u32 %s298_s19, 4  ;;  %s327_s19 = sshll.u32 %s326_s18, 4  ;;  %s300_s20 = int_to_ptr.hbm [resolvable:$true] %s299_s20  ;;  %s328_s19 = int_to_ptr.hbm [resolvable:$true] %s327_s19 }
  0x1a   : > { %764 = dma.hbm_to_vmem [thread:$0]  (!%p1041_p9), %s300_s20, 2048, %s302_s22, %s290_s24, %s938_s30, %s938_s30, %s939_s9  }
  0x1b   : > { %s321_s10 = scalar_lea.vmem [#allocation4], %s739_s16  ;;  %s318_s3 = scalar_lea.sflag [#allocation5], %s1032_s14 }
  0x1c   : > { %s329_s21 = sshll.u32 %s321_s10, 4  ;;  %347 = sbr.rel (%p344_p12) target bundleno = 468 (0x1d4), region = 48  ;;  %s330_s21 = int_to_ptr.vmem [resolvable:$true] %s329_s21 }
  0x1d   : > { %767 = dma.hbm_to_vmem [thread:$0]  (!%p1041_p9), %s328_s19, 2048, %s330_s21, %s318_s3, %s938_s30, %s938_s30, %s939_s9  }
  0x1e   : > { %s349_s8 = sand.u32 (!%p344_p12), 1, %s920_s25  }
  0x1f   : > { %s746_s28 = sshll.u32 (!%p344_p12), %s349_s8, 7  ;;  %s350_s13 = scalar_lea.sflag (!%p344_p12), [#allocation3], %s349_s8 }
  0x20   : > { %s1057_s20 = scalar_lea.vmem (!%p344_p12), [#allocation2], %s746_s28 }
  0x21   : > { %907 = dma.done.wait (%p1023_p7), %s350_s13, 2048  }
  0x22   : > { %909 = vsyncadd (%p1023_p7), %s350_s13, 4294965248  ;;  %s360_s15 = scalar_lea.sflag [#allocation5], %s349_s8  ;;  %s1063_s16 = scalar_lea.vmem [#allocation4], %s746_s28 }
  0x23   : > { %911 = dma.done.wait (%p1023_p7), %s360_s15, 2048  }
  0x24   : > { %913 = vsyncadd (%p1023_p7), %s360_s15, 4294965248  ;;  %p423_p13 = scmp.lt.s32.totalorder %s928_s27, 1  ;;  %v508_v4 = vld [vmem:[%s1057_s20 + $0x78] sm:$0xff]  ;;  %v507_v6 = vld [vmem:[%s1057_s20 + $0x70] sm:$0xff] }
  0x25   : > { %513 = vmatpush.msra.mxu1 %v508_v4  ;;  %v506_v7 = vld [vmem:[%s1057_s20 + $0x68] sm:$0xff]  ;;  %v505_v9 = vld [vmem:[%s1057_s20 + $0x60] sm:$0xff]  ;;  %v504_v11 = vld [vmem:[%s1057_s20 + $0x58] sm:$0xff] }
  0x26   : > { %s1205_s27 = smov (!%p423_p13, %s928_s27), 1  ;;  %v503_v13 = vld [vmem:[%s1057_s20 + $0x50] sm:$0xff]  ;;  %v502_v15 = vld [vmem:[%s1057_s20 + $0x48] sm:$0xff]  ;;  %v501_v17 = vld [vmem:[%s1057_s20 + $0x40] sm:$0xff] }
  0x27   : > { %s756_s3 = sshll.u32 %s1205_s27, 7  ;;  %514 = vmatpush.msra.mxu1 %v507_v6  ;;  %s437_s22 = scalar_lea.vmem %s1180_s2, %s1205_s27  ;;  %v500_v19 = vld [vmem:[%s1057_s20 + $0x38] sm:$0xff]  ;;  %v499_v21 = vld [vmem:[%s1057_s20 + $0x30] sm:$0xff]  ;;  %v498_v23 = vld [vmem:[%s1057_s20 + $0x28] sm:$0xff] }
  0x28   : > { %s1077_s28 = scalar_lea.vmem %s1179_s1, %s756_s3  ;;  %s748_s23 = sshll.u32 %s1205_s27, 3  ;;  %v497_v25 = vld [vmem:[%s1057_s20 + $0x20] sm:$0xff]  ;;  %v496_v27 = vld [vmem:[%s1057_s20 + $0x18] sm:$0xff]  ;;  %v495_v30 = vld [vmem:[%s1057_s20 + $0x10] sm:$0xff] }
  0x29   : > { %v467_v0 = vld [vmem:[%s1077_s28 + $0x78] sm:$0xff]  ;;  %v466_v1 = vld [vmem:[%s1077_s28 + $0x70] sm:$0xff]  ;;  %v465_v2 = vld [vmem:[%s1077_s28 + $0x68] sm:$0xff]  ;;  %515 = vmatpush.msra.mxu1 %v506_v7  ;;  %s429_s9 = scalar_lea.vmem %s1178_s0, %s748_s23  ;;  %s440_s18 = scalar_lea.vmem %s1182_s4, %s1205_s27 }
  0x2a   : > { %472 = vmatpush.msra.mxu0 %v467_v0  ;;  %v464_v3 = vld [vmem:[%s1077_s28 + $0x60] sm:$0xff]  ;;  %v463_v5 = vld [vmem:[%s1077_s28 + $0x58] sm:$0xff]  ;;  %v462_v8 = vld [vmem:[%s1077_s28 + $0x50] sm:$0xff]  ;;  %s443_s15 = scalar_lea.vmem %s1184_s6, %s1205_s27  ;;  %s450_s8 = scalar_lea.vmem %s1185_s7, %s748_s23 }
  0x2b   : > { %v461_v10 = vld [vmem:[%s1077_s28 + $0x48] sm:$0xff]  ;;  %v460_v12 = vld [vmem:[%s1077_s28 + $0x40] sm:$0xff]  ;;  %516 = vmatpush.msra.mxu1 %v505_v9  ;;  %v459_v14 = vld [vmem:[%s1077_s28 + $0x38] sm:$0xff] }
  0x2c   : > { %473 = vmatpush.msra.mxu0 %v466_v1  ;;  %v458_v16 = vld [vmem:[%s1077_s28 + $0x30] sm:$0xff]  ;;  %v457_v18 = vld [vmem:[%s1077_s28 + $0x28] sm:$0xff]  ;;  %v456_v20 = vld [vmem:[%s1077_s28 + $0x20] sm:$0xff] }
  0x2d   : > { %517 = vmatpush.msra.mxu1 %v504_v11  ;;  %v455_v22 = vld [vmem:[%s1077_s28 + $0x18] sm:$0xff]  ;;  %v454_v24 = vld [vmem:[%s1077_s28 + $0x10] sm:$0xff]  ;;  %v453_v26 = vld [vmem:[%s1077_s28 + $0x8] sm:$0xff] }
  0x2e   : > { %474 = vmatpush.msra.mxu0 %v465_v2  ;;  %v452_v28 = vld [vmem:[%s1077_s28] sm:$0xff]  ;;  %v494_v31 = vld [vmem:[%s1057_s20 + $0x8] sm:$0xff]  ;;  %v549_v33 = vld [vmem:[%s1063_s16 + $0x78] sm:$0xff] }
  0x2f   : > { %518 = vmatpush.msra.mxu1 %v503_v13  ;;  %v451_v29 = vld [vmem:[%s429_s9] sm:$0xff]  ;;  %v548_v34 = vld [vmem:[%s1063_s16 + $0x70] sm:$0xff]  ;;  %554 = vmatpush.msra.mxu2 %v549_v33  ;;  %v547_v35 = vld [vmem:[%s1063_s16 + $0x68] sm:$0xff] }
  0x30   : > { %475 = vmatpush.msra.mxu0 %v464_v3  ;;  %v493_v32 = vld [vmem:[%s1057_s20] sm:$0xff]  ;;  %v545_v37 = vld [vmem:[%s1063_s16 + $0x58] sm:$0xff]  ;;  %v544_v38 = vld [vmem:[%s1063_s16 + $0x50] sm:$0xff] }
  0x31   : > { %519 = vmatpush.msra.mxu1 %v502_v15  ;;  %555 = vmatpush.msra.mxu2 %v548_v34  ;;  %v546_v36 = vld [vmem:[%s1063_s16 + $0x60] sm:$0xff]  ;;  %v543_v39 = vld [vmem:[%s1063_s16 + $0x48] sm:$0xff]  ;;  %v541_v41 = vld [vmem:[%s1063_s16 + $0x38] sm:$0xff] }
  0x32   : > { %476 = vmatpush.msra.mxu0 %v463_v5  ;;  %v542_v40 = vld [vmem:[%s1063_s16 + $0x40] sm:$0xff]  ;;  %v540_v42 = vld [vmem:[%s1063_s16 + $0x30] sm:$0xff]  ;;  %v539_v43 = vld [vmem:[%s1063_s16 + $0x28] sm:$0xff] }
  0x33   : > { %520 = vmatpush.msra.mxu1 %v501_v17  ;;  %556 = vmatpush.msra.mxu2 %v547_v35  ;;  %v538_v44 = vld [vmem:[%s1063_s16 + $0x20] sm:$0xff]  ;;  %v537_v45 = vld [vmem:[%s1063_s16 + $0x18] sm:$0xff]  ;;  %v536_v50 = vld [vmem:[%s1063_s16 + $0x10] sm:$0xff] }
  0x34   : > { %477 = vmatpush.msra.mxu0 %v462_v8  ;;  %v819_v46 = vld [vmem:[%s437_s22] ss:$0 sm:$0xff]  ;;  %v535_v51 = vld [vmem:[%s1063_s16 + $0x8] sm:$0xff] }
  0x35   : > { %521 = vmatpush.msra.mxu1 %v500_v19  ;;  %557 = vmatpush.msra.mxu2 %v546_v36  ;;  %v534_v52 = vld [vmem:[%s1063_s16] sm:$0xff] }
  0x36   : > { %478 = vmatpush.msra.mxu0 %v461_v10  ;;  %v820_v53 = vld [vmem:[%s440_s18] ss:$0 sm:$0xff] }
  0x37   : > { %522 = vmatpush.msra.mxu1 %v499_v21  ;;  %558 = vmatpush.msra.mxu2 %v545_v37  ;;  %v821_v57 = vld [vmem:[%s443_s15] ss:$0 sm:$0xff] }
  0x38   : > { %479 = vmatpush.msra.mxu0 %v460_v12 }
  0x39   : > { %523 = vmatpush.msra.mxu1 %v498_v23  ;;  %559 = vmatpush.msra.mxu2 %v544_v38 }
  0x3a   : > { %480 = vmatpush.msra.mxu0 %v459_v14 }
  0x3b   : > { %524 = vmatpush.msra.mxu1 %v497_v25  ;;  %560 = vmatpush.msra.mxu2 %v543_v39 }
  0x3c   : > { %481 = vmatpush.msra.mxu0 %v458_v16 }
  0x3d   : > { %525 = vmatpush.msra.mxu1 %v496_v27  ;;  %561 = vmatpush.msra.mxu2 %v542_v40 }
  0x3e   : > { %482 = vmatpush.msra.mxu0 %v457_v18 }
  0x3f   : > { %526 = vmatpush.msra.mxu1 %v495_v30  ;;  %562 = vmatpush.msra.mxu2 %v541_v41 }
  0x40   : > { %483 = vmatpush.msra.mxu0 %v456_v20 }
  0x41   : > { %527 = vmatpush.msra.mxu1 %v494_v31  ;;  %563 = vmatpush.msra.mxu2 %v540_v42 }
  0x42   : > { %484 = vmatpush.msra.mxu0 %v455_v22 }
  0x43   : > { %528 = vmatpush.msra.mxu1 %v493_v32  ;;  %564 = vmatpush.msra.mxu2 %v539_v43 }
  0x44   : > { %485 = vmatpush.msra.mxu0 %v454_v24 }
  0x45   : > { %565 = vmatpush.msra.mxu2 %v538_v44 }
  0x46   : > { %486 = vmatpush.msra.mxu0 %v453_v26 }
  0x47   : > { %566 = vmatpush.msra.mxu2 %v537_v45 }
  0x48   : > { %487 = vmatpush.msra.mxu0 %v452_v28 }
  0x49   : > { %488 = vmatmul.f32.vlgmr.msra.gmra.mxu0 %v451_v29  ;;  %567 = vmatpush.msra.mxu2 %v536_v50 }
  0x4b   : > { %568 = vmatpush.msra.mxu2 %v535_v51 }
  0x4d   : > { %569 = vmatpush.msra.mxu2 %v534_v52 }
  0xc6   : > { %v489_v47 = vpop.f32.mrf.mxu0 }
  0xc7   : > { %v490_v48 = vadd.f32 %v819_v46, %v489_v47 }
  0xc9   : > { %v492_v49 = vmax.f32 %v490_v48, 0.0 }
  0xcb   : > { %529 = vmatmul.f32.vlgmr.msra.gmra.mxu1 %v492_v49 }
 0x148   : > { %v530_v54 = vpop.f32.mrf.mxu1 }
 0x149   : > { %v531_v55 = vadd.f32 %v820_v53, %v530_v54 }
 0x14b   : > { %v533_v56 = vmax.f32 %v531_v55, 0.0 }
 0x14d   : > { %570 = vmatmul.f32.vlgmr.msra.gmra.mxu2 %v533_v56 }
 0x1d0   : > { %v571_v58 = vpop.f32.mrf.mxu2 }
 0x1d1   : > { %v572_v59 = vadd.f32 %v821_v57, %v571_v58 }
 0x1d3   : > { %574 = vst [vmem:[%s450_s8] sm:$0xff] %v572_v59 }
 0x1d4 PF: > { %s23_s29 = sadd.s32 1, %s936_s29   ;;  %s1196_s16 = sld [smem:[#allocation10_spill]] }
 0x1d5   : > { %p20_p0 = scmp.ge.s32.totalorder %s23_s29, 4   ;;  %s1197_s27 = sld [smem:[#allocation8_spill]] }
 0x1d6   : > { %s1198_s28 = sld [smem:[#allocation9_spill]]  ;;  %s1199_s24 = smov %s920_s25 }
 0x1d7   : > { %s1200_s25 = smov %s924_s26  ;;  %22 = sbr.rel (!%p20_p0) target bundleno = 8 (0x8), region = 116 }
 0x1da   : > { %s1201_s26 = smov %s1196_s16 }
 0x1dc   :  { %600 = vsyncpa [#allocation3], 1 }
 0x1dd   :  { %602 = vsyncpa [#allocation3 + $0x1], 1 }
 0x1de   :  { %603 = vsyncpa [#allocation5], 1 }
 0x1df   :  { %605 = vsyncpa [#allocation5 + $0x1], 1 }

</bundles_post_ra>
